<compile_context>
chip_gen: v5e
topology: v5e:2x2
jax: 0.10.0
libtpu: 0.0.40
codegen_flags: <defaults>
</compile_context>

<pallas_src>
import functools

import jax
import jax.numpy as jnp
import numpy as np
from jax import lax
from jax.experimental import pallas as pl
from jax.experimental.pallas import tpu as pltpu

_NUM_CLASSES = 10
_F_IN = 16 * 49    # 784  flattened input features
_F1 = 176          # 17*10 = 170 -> padded to multiple of 8 (2 lane groups)
_F2 = 232          # 46*5  = 230 -> padded to multiple of 8 (2 lane groups)
_F_OUT = 128       # 10 classes  -> padded to one full lane vreg
_MIN_SPLIT_TILE = 128   # don't shrink tiles below this when splitting for 2 TCs


def _round_up(n, m):
    return ((n + m - 1) // m) * m


def _conv1d_as_matmul(w, lin):
    """Conv1d weight (cout, cin, k) -> banded matmul weight (cin*lin, cout*lout).

    (x.reshape(B, cin*lin) @ result) equals the VALID, stride-1, bias-free
    Conv1d of x:(B, cin, lin) with w, flattened as (B, cout*lout) row-major.
    """
    cout, cin, k = w.shape
    lout = lin - k + 1
    w_t = jnp.transpose(w, (1, 2, 0))                              # (cin, k, cout)
    cols = []
    for t in range(lout):                                          # tiny static loop
        col = jnp.pad(w_t, ((0, 0), (t, lin - k - t), (0, 0)))     # (cin, lin, cout)
        cols.append(col.reshape(cin * lin, cout))
    big = jnp.stack(cols, axis=2)                                  # (cin*lin, cout, lout)
    return big.reshape(cin * lin, cout * lout)


def prepare_weights(w0, w1, w2):
    """Build the bf16 banded matmul weights once (reusable across calls)."""
    w0b = _conv1d_as_matmul(w0.astype(jnp.float32), 49)                       # (784, 170)
    w0b = jnp.pad(w0b, ((0, 0), (0, _F1 - w0b.shape[1])))                     # (784, 176)
    w1b = _conv1d_as_matmul(w1.astype(jnp.float32), 10)                       # (170, 230)
    w1b = jnp.pad(w1b, ((0, _F1 - w1b.shape[0]), (0, _F2 - w1b.shape[1])))    # (176, 232)
    w2b = _conv1d_as_matmul(w2.astype(jnp.float32), 5)                        # (230, 10)
    w2b = jnp.pad(w2b, ((0, _F2 - w2b.shape[0]), (0, _F_OUT - w2b.shape[1]))) # (232, 128)
    return (w0b.astype(jnp.bfloat16),
            w1b.astype(jnp.bfloat16),
            w2b.astype(jnp.bfloat16))


def _net_kernel(x_ref, w0_ref, w1_ref, w2_ref, out_ref):
    x = x_ref[...]                                                       # (TB, 784) bf16
    h0 = jnp.dot(x, w0_ref[...], preferred_element_type=jnp.float32)     # (TB, 176) f32
    h0 = jnp.tanh(h0).astype(jnp.bfloat16)
    h1 = jnp.dot(h0, w1_ref[...], preferred_element_type=jnp.float32)    # (TB, 232) f32
    h1 = jnp.tanh(h1).astype(jnp.bfloat16)
    logits = jnp.dot(h1, w2_ref[...],
                     preferred_element_type=jnp.float32)                 # (TB, 128) f32

    # log-softmax (f32) over the first 10 lanes; lanes 10..127 are zero padding
    # and are sliced off in the wrapper.
    lane = lax.broadcasted_iota(jnp.int32, logits.shape, dimension=1)
    valid = lane < _NUM_CLASSES
    m = jnp.max(jnp.where(valid, logits, -jnp.inf), axis=-1, keepdims=True)
    e = jnp.exp(jnp.where(valid, logits - m, -jnp.inf))                  # exp(-inf)=0
    lse = m + jnp.log(jnp.sum(e, axis=-1, keepdims=True))
    out_ref[...] = logits - lse


def _pick_tile(b, block_b):
    """Batch tile: multiple of 16 (bf16 sublanes); split big batches >=4 ways."""
    tb = min(block_b, _round_up(b, 16))
    quarter = _round_up(-(-b // 4), 16)
    if quarter >= _MIN_SPLIT_TILE:          # only split when tiles stay sizeable
        tb = min(tb, quarter)
    return max(tb, 16)


def _forward_prepared(x, w0b, w1b, w2b, block_b):
    b = x.shape[0]
    x2 = x.reshape(b, _F_IN).astype(jnp.bfloat16)

    tb = _pick_tile(b, block_b)
    b_pad = _round_up(b, tb)
    if b_pad != b:
        x2 = jnp.pad(x2, ((0, b_pad - b), (0, 0)))
    grid_b = b_pad // tb

    flops = 2 * b_pad * (_F_IN * _F1 + _F1 * _F2 + _F2 * _F_OUT)
    transcendentals = b_pad * (_F1 + _F2 + _F_OUT + 1)
    bytes_accessed = (2 * b_pad * _F_IN                       # bf16 input read
                      + 4 * b_pad * _F_OUT                    # f32 output write
                      + 2 * (_F_IN * _F1 + _F1 * _F2 + _F2 * _F_OUT))  # bf16 weights

    out = pl.pallas_call(
        _net_kernel,
        out_shape=jax.ShapeDtypeStruct((b_pad, _F_OUT), jnp.float32),
        grid=(grid_b,),
        in_specs=[
            pl.BlockSpec((tb, _F_IN), lambda i: (i, 0)),       # batch-tiled input
            pl.BlockSpec((_F_IN, _F1), lambda i: (0, 0)),      # resident weights
            pl.BlockSpec((_F1, _F2), lambda i: (0, 0)),
            pl.BlockSpec((_F2, _F_OUT), lambda i: (0, 0)),
        ],
        out_specs=pl.BlockSpec((tb, _F_OUT), lambda i: (i, 0)),
        compiler_params=pltpu.CompilerParams(
            dimension_semantics=("parallel",),
            vmem_limit_bytes=32 * 1024 * 1024),
        cost_estimate=pl.CostEstimate(
            flops=flops,
            transcendentals=transcendentals,
            bytes_accessed=bytes_accessed),
    )(x2, w0b, w1b, w2b)

    return out[:b, :_NUM_CLASSES]


@functools.partial(jax.jit, static_argnames=("block_b",))
def conv1dtanh_10(x, w0, w1, w2, block_b=2048):
    """x: any shape with B*16*49 elements (e.g. (B,1,28,28)); returns (B,10) f32."""
    w0b, w1b, w2b = prepare_weights(w0, w1, w2)
    return _forward_prepared(x, w0b, w1b, w2b, block_b)


def _reference(x, w0, w1, w2):
    """Pure-JAX f32 reference using lax.conv_general_dilated (NCH layout)."""
    b = x.shape[0]
    h = x.reshape(b, 16, 49).astype(jnp.float32)
    dn = ("NCH", "OIH", "NCH")
    h = jnp.tanh(lax.conv_general_dilated(h, w0, (1,), "VALID", dimension_numbers=dn))
    h = jnp.tanh(lax.conv_general_dilated(h, w1, (1,), "VALID", dimension_numbers=dn))
    h = lax.conv_general_dilated(h, w2, (1,), "VALID", dimension_numbers=dn)
    return jax.nn.log_softmax(h.reshape(b, 10), axis=1)


def _init_params(key):
    """Deterministic init mimicking PyTorch Conv1d default: U(-1/sqrt(fan_in), +)."""
    k0, k1, k2 = jax.random.split(key, 3)
    b0 = 1.0 / np.sqrt(16 * 40)
    b1 = 1.0 / np.sqrt(17 * 6)
    b2 = 1.0 / np.sqrt(46 * 5)
    w0 = jax.random.uniform(k0, (17, 16, 40), jnp.float32, -b0, b0)
    w1 = jax.random.uniform(k1, (46, 17, 6), jnp.float32, -b1, b1)
    w2 = jax.random.uniform(k2, (10, 46, 5), jnp.float32, -b2, b2)
    return w0, w1, w2


if __name__ == "__main__":
    key = jax.random.PRNGKey(0)
    kx, kw, kx2 = jax.random.split(key, 3)

    w0, w1, w2 = _init_params(kw)

    # Small batch consistent with the module's view: B*1*28*28 = B*16*49 elems.
    x = jax.random.normal(kx, (2, 1, 28, 28), jnp.float32)
    out = jax.block_until_ready(conv1dtanh_10(x, w0, w1, w2))
    ref = jax.block_until_ready(_reference(x, w0, w1, w2))
    # bf16 matmul inputs (f32 accumulation / log-softmax) -> relaxed tolerance.
    np.testing.assert_allclose(np.asarray(out), np.asarray(ref), rtol=2e-2, atol=2e-2)

    # Larger batch exercising the multi-tile grid + batch-padding path.
    xb = jax.random.normal(kx2, (40, 1, 28, 28), jnp.float32)
    outb = jax.block_until_ready(conv1dtanh_10(xb, w0, w1, w2, block_b=16))
    refb = jax.block_until_ready(_reference(xb, w0, w1, w2))
    np.testing.assert_allclose(np.asarray(outb), np.asarray(refb), rtol=2e-2, atol=2e-2)

    print("KERNEL_OK")
</pallas_src>

<mosaic_0001>
module attributes {stable_mosaic.version = 11 : i64} {
  func.func @_net_kernel(%arg0: i32, %arg1: memref<16x784xbf16, #tpu.memory_space<vmem>>, %arg2: memref<784x176xbf16, #tpu.memory_space<vmem>>, %arg3: memref<176x232xbf16, #tpu.memory_space<vmem>>, %arg4: memref<232x128xbf16, #tpu.memory_space<vmem>>, %arg5: memref<16x128xf32, #tpu.memory_space<vmem>>) attributes {dimension_semantics = [#tpu.dimension_semantics<parallel>], iteration_bounds = array<i64: 1>, scalar_prefetch = 0 : i64, scratch_operands = 0 : i64, tpu.core_type = #tpu.core_type<tc>, window_params = [{transform_indices = @transform_0, window_bounds = array<i64: 16, 784>}, {pipeline_mode = #tpu.pipeline_mode<synchronous>, transform_indices = @transform_1, window_bounds = array<i64: 784, 176>}, {pipeline_mode = #tpu.pipeline_mode<synchronous>, transform_indices = @transform_2, window_bounds = array<i64: 176, 232>}, {pipeline_mode = #tpu.pipeline_mode<synchronous>, transform_indices = @transform_3, window_bounds = array<i64: 232, 128>}, {transform_indices = @transform_4, window_bounds = array<i64: 16, 128>}]} {
    %c0 = arith.constant 0 : index
    %c0_0 = arith.constant 0 : index
    %0 = vector.load %arg1[%c0, %c0_0] : memref<16x784xbf16, #tpu.memory_space<vmem>>, vector<16x784xbf16>
    %c0_1 = arith.constant 0 : index
    %c0_2 = arith.constant 0 : index
    %1 = vector.load %arg2[%c0_1, %c0_2] : memref<784x176xbf16, #tpu.memory_space<vmem>>, vector<784x176xbf16>
    %cst = arith.constant dense<0.000000e+00> : vector<16x176xf32>
    %2 = tpu.matmul %0, %1, %cst {dimension_numbers = #tpu.dot_dimension_numbers<[1], [0], [0], [1], [0, 0, 1, 1], [], []>} : vector<16x784xbf16>, vector<784x176xbf16>, vector<16x176xf32> -> vector<16x176xf32>
    %3 = math.tanh %2 : vector<16x176xf32>
    %4 = arith.truncf %3 : vector<16x176xf32> to vector<16x176xbf16>
    %c0_3 = arith.constant 0 : index
    %c0_4 = arith.constant 0 : index
    %5 = vector.load %arg3[%c0_3, %c0_4] : memref<176x232xbf16, #tpu.memory_space<vmem>>, vector<176x232xbf16>
    %cst_5 = arith.constant dense<0.000000e+00> : vector<16x232xf32>
    %6 = tpu.matmul %4, %5, %cst_5 {dimension_numbers = #tpu.dot_dimension_numbers<[1], [0], [0], [1], [0, 0, 1, 1], [], []>} : vector<16x176xbf16>, vector<176x232xbf16>, vector<16x232xf32> -> vector<16x232xf32>
    %7 = math.tanh %6 : vector<16x232xf32>
    %8 = arith.truncf %7 : vector<16x232xf32> to vector<16x232xbf16>
    %c0_6 = arith.constant 0 : index
    %c0_7 = arith.constant 0 : index
    %9 = vector.load %arg4[%c0_6, %c0_7] : memref<232x128xbf16, #tpu.memory_space<vmem>>, vector<232x128xbf16>
    %cst_8 = arith.constant dense<0.000000e+00> : vector<16x128xf32>
    %10 = tpu.matmul %8, %9, %cst_8 {dimension_numbers = #tpu.dot_dimension_numbers<[1], [0], [0], [1], [0, 0, 1, 1], [], []>} : vector<16x232xbf16>, vector<232x128xbf16>, vector<16x128xf32> -> vector<16x128xf32>
    %11 = tpu.iota {dimensions = array<i32: 1>} : vector<16x128xi32>
    %c10_i32 = arith.constant 10 : i32
    %12 = vector.broadcast %c10_i32 : i32 to vector<16x128xi32>
    %13 = arith.cmpi slt, %11, %12 : vector<16x128xi32>
    %cst_9 = arith.constant 0xFF800000 : f32
    %14 = vector.broadcast %cst_9 : f32 to vector<16x128xf32>
    %15 = arith.select %13, %10, %14 : vector<16x128xi1>, vector<16x128xf32>
    %cst_10 = arith.constant dense<0xFF800000> : vector<16xf32>
    %16 = vector.multi_reduction <maximumf>, %15, %cst_10 [1] : vector<16x128xf32> to vector<16xf32>
    %17 = vector.shape_cast %16 : vector<16xf32> to vector<16x1xf32>
    %18 = vector.broadcast %17 : vector<16x1xf32> to vector<16x128xf32>
    %19 = arith.subf %10, %18 : vector<16x128xf32>
    %cst_11 = arith.constant 0xFF800000 : f32
    %20 = vector.broadcast %cst_11 : f32 to vector<16x128xf32>
    %21 = arith.select %13, %19, %20 : vector<16x128xi1>, vector<16x128xf32>
    %22 = math.exp %21 : vector<16x128xf32>
    %cst_12 = arith.constant dense<0.000000e+00> : vector<16xf32>
    %23 = vector.multi_reduction <add>, %22, %cst_12 [1] : vector<16x128xf32> to vector<16xf32>
    %24 = vector.shape_cast %23 : vector<16xf32> to vector<16x1xf32>
    %25 = math.log %24 : vector<16x1xf32>
    %26 = arith.addf %17, %25 : vector<16x1xf32>
    %27 = vector.broadcast %26 : vector<16x1xf32> to vector<16x128xf32>
    %28 = arith.subf %10, %27 : vector<16x128xf32>
    %c0_13 = arith.constant 0 : index
    %c0_14 = arith.constant 0 : index
    %29 = vector.load %arg5[%c0_13, %c0_14] : memref<16x128xf32, #tpu.memory_space<vmem>>, vector<16x128xf32>
    tpu.vector_store %arg5[%c0_13, %c0_14], %28 {strides = array<i32>} : memref<16x128xf32, #tpu.memory_space<vmem>>, vector<16x128xf32>,
    return
  }
  func.func @transform_0(%arg0: i32) -> (i32, i32) {
    %c0_i32 = arith.constant 0 : i32
    %c0_i32_0 = arith.constant 0 : i32
    return %arg0, %c0_i32 : i32, i32
  }
  func.func @transform_1(%arg0: i32) -> (i32, i32) {
    %c0_i32 = arith.constant 0 : i32
    %c0_i32_0 = arith.constant 0 : i32
    %c0_i32_1 = arith.constant 0 : i32
    return %c0_i32, %c0_i32_0 : i32, i32
  }
  func.func @transform_2(%arg0: i32) -> (i32, i32) {
    %c0_i32 = arith.constant 0 : i32
    %c0_i32_0 = arith.constant 0 : i32
    %c0_i32_1 = arith.constant 0 : i32
    return %c0_i32, %c0_i32_0 : i32, i32
  }
  func.func @transform_3(%arg0: i32) -> (i32, i32) {
    %c0_i32 = arith.constant 0 : i32
    %c0_i32_0 = arith.constant 0 : i32
    %c0_i32_1 = arith.constant 0 : i32
    return %c0_i32, %c0_i32_0 : i32, i32
  }
  func.func @transform_4(%arg0: i32) -> (i32, i32) {
    %c0_i32 = arith.constant 0 : i32
    %c0_i32_0 = arith.constant 0 : i32
    return %arg0, %c0_i32 : i32, i32
  }
}

</mosaic_0001>

<bundles_post_ra>
// kernel: conv1dtanh_10.1
= control target key start
LH: loop header
LB: loop body
LE: loop exit
PB: predicated region body
PF: predicated region fallthrough
CT: control target
= control target key end

     0   :  { %vm649_vm0 = vcmask 130048   ;;  %vm987_vm1 = vcmask 392192   ;;  %vm1173_vm2 = vcmask 1043456   ;;  %vm1169_vm3 = vcmask 850944   ;;  %s2846_s1 = inlined_call_operand.vmem [shape: bf16[784,176], index: 1, kind: input, shape index: {}]   ;;  %s2847_s0 = inlined_call_operand.vmem [shape: bf16[16,784], index: 0, kind: input, shape index: {}]   ;;  %s2848_s2 = inlined_call_operand.vmem [shape: bf16[176,232], index: 2, kind: input, shape index: {}]   ;;  %s2849_s3 = inlined_call_operand.vmem [shape: bf16[232,128], index: 3, kind: input, shape index: {}]   ;;  %s2850_s4 = inlined_call_operand.vmem [shape: f32[16,128], index: 4, kind: output, shape index: {}]  }
   0x1   :  { %v1326_v0 = vld [vmem:[%s2846_s1 + $0x70] sm:$0xf]  ;;  %v1831_v1 = vld [vmem:[%s2846_s1 + $0x74] sm:$0xf0]  ;;  %v1318_v11 = vld [vmem:[%s2846_s1 + $0x60] sm:$0xf] }
   0x2   :  { %v1454_v2 = vld [vmem:[%s2846_s1 + $0x170] sm:$0xf]  ;;  %v1327_v3 = vor.u32 %v1831_v1, %v1326_v0  ;;  %v1863_v4 = vld [vmem:[%s2846_s1 + $0x174] sm:$0xf0]  ;;  %v1829_v13 = vld [vmem:[%s2846_s1 + $0x64] sm:$0xf0] }
   0x3   :  { %v1518_v5 = vld [vmem:[%s2846_s1 + $0x1f0] sm:$0xf]  ;;  %v1879_v6 = vld [vmem:[%s2846_s1 + $0x1f4] sm:$0xf0]  ;;  %v1455_v7 = vor.u32 %v1863_v4, %v1454_v2  ;;  %v1446_v14 = vld [vmem:[%s2846_s1 + $0x160] sm:$0xf]  ;;  %v1319_v16 = vor.u32 %v1829_v13, %v1318_v11 }
   0x4   :  { %v1519_v8 = vor.u32 %v1879_v6, %v1518_v5  ;;  %v1390_v9 = vld [vmem:[%s2846_s1 + $0xf0] sm:$0xf]  ;;  %v1847_v10 = vld [vmem:[%s2846_s1 + $0xf4] sm:$0xf0]  ;;  %653 = vmatpush.bf16.msra.mxu0 %v1327_v3  ;;  %v1861_v15 = vld [vmem:[%s2846_s1 + $0x164] sm:$0xf0] }
   0x5   :  { %v1391_v12 = vor.u32 %v1847_v10, %v1390_v9  ;;  %681 = vmatpush.bf16.msra.mxu2 %v1455_v7  ;;  %v1447_v17 = vor.u32 %v1861_v15, %v1446_v14  ;;  %v1510_v18 = vld [vmem:[%s2846_s1 + $0x1e0] sm:$0xf]  ;;  %v1877_v19 = vld [vmem:[%s2846_s1 + $0x1e4] sm:$0xf0]  ;;  %v1310_v23 = vld [vmem:[%s2846_s1 + $0x50] sm:$0xf] }
   0x6   :  { %695 = vmatpush.bf16.msra.mxu3 %v1519_v8  ;;  %v1382_v20 = vld [vmem:[%s2846_s1 + $0xe0] sm:$0xf]  ;;  %v1511_v21 = vor.u32 %v1877_v19, %v1510_v18  ;;  %v1845_v22 = vld [vmem:[%s2846_s1 + $0xe4] sm:$0xf0]  ;;  %v1827_v24 = vld [vmem:[%s2846_s1 + $0x54] sm:$0xf0] }
   0x7   :  { %667 = vmatpush.bf16.msra.mxu1 %v1391_v12  ;;  %v1383_v25 = vor.u32 %v1845_v22, %v1382_v20  ;;  %v1438_v26 = vld [vmem:[%s2846_s1 + $0x150] sm:$0xf]  ;;  %v1859_v27 = vld [vmem:[%s2846_s1 + $0x154] sm:$0xf0]  ;;  %v1311_v29 = vor.u32 %v1827_v24, %v1310_v23  ;;  %v1302_v35 = vld [vmem:[%s2846_s1 + $0x40] sm:$0xf] }
   0x8   :  { %v1502_v28 = vld [vmem:[%s2846_s1 + $0x1d0] sm:$0xf]  ;;  %654 = vmatpush.bf16.msra.mxu0 %v1319_v16  ;;  %v1875_v30 = vld [vmem:[%s2846_s1 + $0x1d4] sm:$0xf0]  ;;  %v1439_v33 = vor.u32 %v1859_v27, %v1438_v26  ;;  %v1825_v36 = vld [vmem:[%s2846_s1 + $0x44] sm:$0xf0] }
   0x9   :  { %v1374_v31 = vld [vmem:[%s2846_s1 + $0xd0] sm:$0xf]  ;;  %v1843_v32 = vld [vmem:[%s2846_s1 + $0xd4] sm:$0xf0]  ;;  %682 = vmatpush.bf16.msra.mxu2 %v1447_v17  ;;  %v1503_v34 = vor.u32 %v1875_v30, %v1502_v28  ;;  %v1430_v37 = vld [vmem:[%s2846_s1 + $0x140] sm:$0xf]  ;;  %v1303_v44 = vor.u32 %v1825_v36, %v1302_v35 }
   0xa   :  { %696 = vmatpush.bf16.msra.mxu3 %v1511_v21  ;;  %v1375_v38 = vor.u32 %v1843_v32, %v1374_v31  ;;  %v1857_v39 = vld [vmem:[%s2846_s1 + $0x144] sm:$0xf0]  ;;  %v1494_v40 = vld [vmem:[%s2846_s1 + $0x1c0] sm:$0xf]  ;;  %v1294_v47 = vld [vmem:[%s2846_s1 + $0x30] sm:$0xf] }
   0xb   :  { %668 = vmatpush.bf16.msra.mxu1 %v1383_v25  ;;  %v1873_v41 = vld [vmem:[%s2846_s1 + $0x1c4] sm:$0xf0]  ;;  %v1366_v42 = vld [vmem:[%s2846_s1 + $0xc0] sm:$0xf]  ;;  %v1431_v45 = vor.u32 %v1857_v39, %v1430_v37  ;;  %v1823_v48 = vld [vmem:[%s2846_s1 + $0x34] sm:$0xf0] }
   0xc   :  { %v1841_v43 = vld [vmem:[%s2846_s1 + $0xc4] sm:$0xf0]  ;;  %655 = vmatpush.bf16.msra.mxu0 %v1311_v29  ;;  %v1495_v46 = vor.u32 %v1873_v41, %v1494_v40  ;;  %v1422_v49 = vld [vmem:[%s2846_s1 + $0x130] sm:$0xf]  ;;  %v1855_v51 = vld [vmem:[%s2846_s1 + $0x134] sm:$0xf0]  ;;  %v1295_v56 = vor.u32 %v1823_v48, %v1294_v47 }
   0xd   :  { %683 = vmatpush.bf16.msra.mxu2 %v1439_v33  ;;  %v1367_v50 = vor.u32 %v1841_v43, %v1366_v42  ;;  %v1486_v52 = vld [vmem:[%s2846_s1 + $0x1b0] sm:$0xf]  ;;  %v1871_v53 = vld [vmem:[%s2846_s1 + $0x1b4] sm:$0xf0]  ;;  %v1423_v57 = vor.u32 %v1855_v51, %v1422_v49  ;;  %v1286_v59 = vld [vmem:[%s2846_s1 + $0x20] sm:$0xf] }
   0xe   :  { %697 = vmatpush.bf16.msra.mxu3 %v1503_v34  ;;  %v1358_v54 = vld [vmem:[%s2846_s1 + $0xb0] sm:$0xf]  ;;  %v1839_v55 = vld [vmem:[%s2846_s1 + $0xb4] sm:$0xf0]  ;;  %v1487_v58 = vor.u32 %v1871_v53, %v1486_v52  ;;  %v1821_v60 = vld [vmem:[%s2846_s1 + $0x24] sm:$0xf0] }
   0xf   :  { %669 = vmatpush.bf16.msra.mxu1 %v1375_v38  ;;  %v1414_v61 = vld [vmem:[%s2846_s1 + $0x120] sm:$0xf]  ;;  %v1359_v62 = vor.u32 %v1839_v55, %v1358_v54  ;;  %v1853_v63 = vld [vmem:[%s2846_s1 + $0x124] sm:$0xf0]  ;;  %v1287_v4 = vor.u32 %v1821_v60, %v1286_v59  ;;  %v1278_v5 = vld [vmem:[%s2846_s1 + $0x10] sm:$0xf] }
  0x10   :  { %656 = vmatpush.bf16.msra.mxu0 %v1303_v44  ;;  %v1478_v0 = vld [vmem:[%s2846_s1 + $0x1a0] sm:$0xf]  ;;  %v1869_v1 = vld [vmem:[%s2846_s1 + $0x1a4] sm:$0xf0]  ;;  %v1415_v6 = vor.u32 %v1853_v63, %v1414_v61  ;;  %v1819_v8 = vld [vmem:[%s2846_s1 + $0x14] sm:$0xf0] }
  0x11   :  { %684 = vmatpush.bf16.msra.mxu2 %v1431_v45  ;;  %v1350_v2 = vld [vmem:[%s2846_s1 + $0xa0] sm:$0xf]  ;;  %v1837_v3 = vld [vmem:[%s2846_s1 + $0xa4] sm:$0xf0]  ;;  %v1479_v7 = vor.u32 %v1869_v1, %v1478_v0  ;;  %v1406_v9 = vld [vmem:[%s2846_s1 + $0x110] sm:$0xf]  ;;  %v1279_v18 = vor.u32 %v1819_v8, %v1278_v5 }
  0x12   :  { %698 = vmatpush.bf16.msra.mxu3 %v1495_v46  ;;  %v1851_v10 = vld [vmem:[%s2846_s1 + $0x114] sm:$0xf0]  ;;  %v1351_v11 = vor.u32 %v1837_v3, %v1350_v2  ;;  %v1470_v12 = vld [vmem:[%s2846_s1 + $0x190] sm:$0xf]  ;;  %v1270_v16 = vld [vmem:[%s2846_s1] sm:$0xf] }
  0x13   :  { %670 = vmatpush.bf16.msra.mxu1 %v1367_v50  ;;  %v1867_v13 = vld [vmem:[%s2846_s1 + $0x194] sm:$0xf0]  ;;  %v1342_v14 = vld [vmem:[%s2846_s1 + $0x90] sm:$0xf]  ;;  %v1817_v17 = vld [vmem:[%s2846_s1 + $0x4] sm:$0xf0]  ;;  %v1407_v23 = vor.u32 %v1851_v10, %v1406_v9 }
  0x14   :  { %657 = vmatpush.bf16.msra.mxu0 %v1295_v56  ;;  %v1835_v15 = vld [vmem:[%s2846_s1 + $0x94] sm:$0xf0]  ;;  %v1398_v19 = vld [vmem:[%s2846_s1 + $0x100] sm:$0xf]  ;;  %v1849_v20 = vld [vmem:[%s2846_s1 + $0x104] sm:$0xf0]  ;;  %v1471_v24 = vor.u32 %v1867_v13, %v1470_v12  ;;  %v1271_v35 = vor.u32 %v1817_v17, %v1270_v16 }
  0x15   :  { %685 = vmatpush.bf16.msra.mxu2 %v1423_v57  ;;  %v1462_v21 = vld [vmem:[%s2846_s1 + $0x180] sm:$0xf]  ;;  %v1865_v22 = vld [vmem:[%s2846_s1 + $0x184] sm:$0xf0]  ;;  %v1582_v25 = vld [vmem:[%s2846_s1 + $0x270] sm:$0xf]  ;;  %v1343_v28 = vor.u32 %v1835_v15, %v1342_v14  ;;  %v1399_v39 = vor.u32 %v1849_v20, %v1398_v19 }
  0x16   :  { %699 = vmatpush.bf16.msra.mxu3 %v1487_v58  ;;  %v1895_v26 = vld [vmem:[%s2846_s1 + $0x274] sm:$0xf0]  ;;  %v1830_v27 = vld [vmem:[%s2846_s1 + $0x74] sm:$0xf]  ;;  %v1328_v29 = vld [vmem:[%s2846_s1 + $0x78] sm:$0xf0]  ;;  %v1463_v40 = vor.u32 %v1865_v22, %v1462_v21 }
  0x17   :  { %671 = vmatpush.bf16.msra.mxu1 %v1359_v62  ;;  %v1334_v30 = vld [vmem:[%s2846_s1 + $0x80] sm:$0xf]  ;;  %v1833_v31 = vld [vmem:[%s2846_s1 + $0x84] sm:$0xf0]  ;;  %v1813_v33 = vld [vmem:[%s2847_s0 + $0x20] sm:$0xf0]  ;;  %v1583_v44 = vor.u32 %v1895_v26, %v1582_v25  ;;  %v1331_v45 = vor.u32 %v1830_v27, %v1328_v29 }
  0x18   :  { %658 = vmatpush.bf16.msra.mxu0 %v1287_v4  ;;  %v1250_v32 = vld [vmem:[%s2847_s0 + $0x8] sm:$0xf]  ;;  %v1646_v34 = vld [vmem:[%s2846_s1 + $0x2f0] sm:$0xf]  ;;  %v1911_v36 = vld [vmem:[%s2846_s1 + $0x2f4] sm:$0xf0]  ;;  %v1335_v49 = vor.u32 %v1833_v31, %v1334_v30 }
  0x19   :  { %686 = vmatpush.bf16.msra.mxu2 %v1415_v6  ;;  %v1654_v37 = vld [vmem:[%s2846_s1 + $0x300] sm:$0xf]  ;;  %v1913_v38 = vld [vmem:[%s2846_s1 + $0x304] sm:$0xf0]  ;;  %v1846_v41 = vld [vmem:[%s2846_s1 + $0xf4] sm:$0xf]  ;;  %v2248_v54 = vor.u32 %v1813_v33, %v1250_v32  ;;  %v1647_v55 = vor.u32 %v1911_v36, %v1646_v34 }
  0x1a   :  { %700 = vmatpush.bf16.msra.mxu3 %v1479_v7  ;;  %v1392_v42 = vld [vmem:[%s2846_s1 + $0xf8] sm:$0xf0]  ;;  %v1810_v43 = vld [vmem:[%s2847_s0 + $0xc] sm:$0xf]  ;;  %v1252_v46 = vld [vmem:[%s2847_s0 + $0x24] sm:$0xf0]  ;;  %v1655_v50 = vor.u32 %v1913_v38, %v1654_v37 }
  0x1b   :  { %672 = vmatpush.bf16.msra.mxu1 %v1351_v11  ;;  %v1574_v47 = vld [vmem:[%s2846_s1 + $0x260] sm:$0xf]  ;;  %v1893_v48 = vld [vmem:[%s2846_s1 + $0x264] sm:$0xf0]  ;;  %v1828_v51 = vld [vmem:[%s2846_s1 + $0x64] sm:$0xf]  ;;  %v1395_v59 = vor.u32 %v1846_v41, %v1392_v42  ;;  %v2259_v60 = vor.u32 %v1810_v43, %v1252_v46 }
  0x1c   :  { %659 = vmatpush.bf16.msra.mxu0 %v1279_v18  ;;  %v1320_v52 = vld [vmem:[%s2846_s1 + $0x68] sm:$0xf0]  ;;  %v1242_v53 = vld [vmem:[%s2847_s0] sm:$0xf]  ;;  %v1812_v56 = vld [vmem:[%s2847_s0 + $0x18] sm:$0xf0]  ;;  %v1575_v63 = vor.u32 %v1893_v48, %v1574_v47 }
  0x1d   :  { %687 = vmatpush.bf16.msra.mxu2 %v1407_v23  ;;  %v1809_v57 = vld [vmem:[%s2847_s0 + $0x4] sm:$0xf]  ;;  %v1244_v58 = vld [vmem:[%s2847_s0 + $0x1c] sm:$0xf0]  ;;  %v1909_v62 = vld [vmem:[%s2846_s1 + $0x2e4] sm:$0xf0]  ;;  %v1323_v0 = vor.u32 %v1828_v51, %v1320_v52  ;;  %v2276_v4 = vor.u32 %v1812_v56, %v1242_v53 }
  0x1e   :  { %701 = vmatpush.bf16.msra.mxu3 %v1471_v24  ;;  %v1638_v61 = vld [vmem:[%s2846_s1 + $0x2e0] sm:$0xf]  ;;  %v1844_v1 = vld [vmem:[%s2846_s1 + $0xe4] sm:$0xf]  ;;  %v1384_v2 = vld [vmem:[%s2846_s1 + $0xe8] sm:$0xf0]  ;;  %v2278_v5 = vor.u32 %v1809_v57, %v1244_v58 }
  0x1f   :  { %673 = vmatpush.bf16.msra.mxu1 %v1343_v28  ;;  %v1566_v3 = vld [vmem:[%s2846_s1 + $0x250] sm:$0xf]  ;;  %v1891_v6 = vld [vmem:[%s2846_s1 + $0x254] sm:$0xf0]  ;;  %v1826_v7 = vld [vmem:[%s2846_s1 + $0x54] sm:$0xf]  ;;  %v1639_v9 = vor.u32 %v1909_v62, %v1638_v61  ;;  %v1387_v10 = vor.u32 %v1844_v1, %v1384_v2 }
  0x20   :  { %660 = vmatpush.bf16.msra.mxu0 %v1271_v35  ;;  %v1312_v8 = vld [vmem:[%s2846_s1 + $0x58] sm:$0xf0]  ;;  %v1630_v11 = vld [vmem:[%s2846_s1 + $0x2d0] sm:$0xf]  ;;  %v1907_v12 = vld [vmem:[%s2846_s1 + $0x2d4] sm:$0xf0]  ;;  %v1567_v13 = vor.u32 %v1891_v6, %v1566_v3 }
  0x21   :  { %688 = vmatpush.bf16.msra.mxu2 %v1399_v39  ;;  %v1315_v14 = vor.u32 %v1826_v7, %v1312_v8  ;;  %v1842_v15 = vld [vmem:[%s2846_s1 + $0xd4] sm:$0xf]  ;;  %v1376_v16 = vld [vmem:[%s2846_s1 + $0xd8] sm:$0xf0]  ;;  %v1558_v17 = vld [vmem:[%s2846_s1 + $0x240] sm:$0xf]  ;;  %v1631_v21 = vor.u32 %v1907_v12, %v1630_v11 }
  0x22   :  { %702 = vmatpush.bf16.msra.mxu3 %v1463_v40  ;;  %v1889_v18 = vld [vmem:[%s2846_s1 + $0x244] sm:$0xf0]  ;;  %v1824_v19 = vld [vmem:[%s2846_s1 + $0x44] sm:$0xf]  ;;  %v1304_v20 = vld [vmem:[%s2846_s1 + $0x48] sm:$0xf0]  ;;  %v1379_v22 = vor.u32 %v1842_v15, %v1376_v16 }
  0x23   :  { %674 = vmatpush.bf16.msra.mxu1 %v1335_v49  ;;  %661 = vmatmul.bf16.vlgmr.msra.gmra.mxu0 %v2276_v4  ;;  %v1622_v23 = vld [vmem:[%s2846_s1 + $0x2c0] sm:$0xf]  ;;  %v1905_v24 = vld [vmem:[%s2846_s1 + $0x2c4] sm:$0xf0]  ;;  %v1559_v25 = vor.u32 %v1889_v18, %v1558_v17  ;;  %v1307_v26 = vor.u32 %v1824_v19, %v1304_v20  ;;  %v1840_v27 = vld [vmem:[%s2846_s1 + $0xc4] sm:$0xf] }
  0x24   :  { %709 = vmatpush.bf16.msrb.mxu0 %v1583_v44  ;;  %689 = vmatmul.bf16.vlgmr.msra.gmra.mxu2 %v2248_v54  ;;  %v1368_v28 = vld [vmem:[%s2846_s1 + $0xc8] sm:$0xf0]  ;;  %v1550_v29 = vld [vmem:[%s2846_s1 + $0x230] sm:$0xf]  ;;  %v1887_v30 = vld [vmem:[%s2846_s1 + $0x234] sm:$0xf0]  ;;  %v1623_v33 = vor.u32 %v1905_v24, %v1622_v23 }
  0x25   :  { %744 = vmatpush.bf16.msrb.mxu2 %v1655_v50  ;;  %703 = vmatmul.bf16.vlgmr.msra.gmra.mxu3 %v2259_v60  ;;  %v1822_v31 = vld [vmem:[%s2846_s1 + $0x34] sm:$0xf]  ;;  %v1296_v32 = vld [vmem:[%s2846_s1 + $0x38] sm:$0xf0]  ;;  %v1614_v34 = vld [vmem:[%s2846_s1 + $0x2b0] sm:$0xf]  ;;  %v1371_v35 = vor.u32 %v1840_v27, %v1368_v28  ;;  %v1551_v39 = vor.u32 %v1887_v30, %v1550_v29 }
  0x26   :  { %751 = vmatpush.bf16.msrb.mxu3 %v1331_v45  ;;  %675 = vmatmul.bf16.vlgmr.msra.gmra.mxu1 %v2278_v5  ;;  %v1903_v36 = vld [vmem:[%s2846_s1 + $0x2b4] sm:$0xf0]  ;;  %v1815_v38 = vld [vmem:[%s2847_s0 + $0x30] sm:$0xf0]  ;;  %v1299_v40 = vor.u32 %v1822_v31, %v1296_v32  ;;  %v1360_v42 = vld [vmem:[%s2846_s1 + $0xb8] sm:$0xf0] }
  0x27   :  { %723 = vmatpush.bf16.msrb.mxu1 %v1647_v55  ;;  %v1266_v37 = vld [vmem:[%s2847_s0 + $0x18] sm:$0xf]  ;;  %v1838_v41 = vld [vmem:[%s2846_s1 + $0xb4] sm:$0xf]  ;;  %v1542_v43 = vld [vmem:[%s2846_s1 + $0x220] sm:$0xf]  ;;  %v1615_v47 = vor.u32 %v1903_v36, %v1614_v34 }
  0x28   :  { %710 = vmatpush.bf16.msrb.mxu0 %v1575_v63  ;;  %v1885_v44 = vld [vmem:[%s2846_s1 + $0x224] sm:$0xf0]  ;;  %v1820_v45 = vld [vmem:[%s2846_s1 + $0x24] sm:$0xf]  ;;  %v1288_v46 = vld [vmem:[%s2846_s1 + $0x28] sm:$0xf0]  ;;  %v2371_v48 = vor.u32 %v1815_v38, %v1266_v37  ;;  %v1363_v49 = vor.u32 %v1838_v41, %v1360_v42 }
  0x29   :  { %765 = vmatpush.bf16.msra.mxu2 %v1395_v59  ;;  %v1606_v50 = vld [vmem:[%s2846_s1 + $0x2a0] sm:$0xf]  ;;  %v1901_v51 = vld [vmem:[%s2846_s1 + $0x2a4] sm:$0xf0]  ;;  %v1543_v52 = vor.u32 %v1885_v44, %v1542_v43  ;;  %v1291_v53 = vor.u32 %v1820_v45, %v1288_v46  ;;  %v1836_v55 = vld [vmem:[%s2846_s1 + $0xa4] sm:$0xf] }
  0x2a   :  { %752 = vmatpush.bf16.msrb.mxu3 %v1323_v0  ;;  %v1352_v56 = vld [vmem:[%s2846_s1 + $0xa8] sm:$0xf0]  ;;  %v1534_v57 = vld [vmem:[%s2846_s1 + $0x210] sm:$0xf]  ;;  %v1883_v58 = vld [vmem:[%s2846_s1 + $0x214] sm:$0xf0]  ;;  %v1607_v62 = vor.u32 %v1901_v51, %v1606_v50 }
  0x2b   :  { %724 = vmatpush.bf16.msrb.mxu1 %v1639_v9  ;;  %v1818_v59 = vld [vmem:[%s2846_s1 + $0x14] sm:$0xf]  ;;  %v1280_v61 = vld [vmem:[%s2846_s1 + $0x18] sm:$0xf0]  ;;  %v1598_v63 = vld [vmem:[%s2846_s1 + $0x290] sm:$0xf]  ;;  %v1355_v1 = vor.u32 %v1836_v55, %v1352_v56  ;;  %v1535_v7 = vor.u32 %v1883_v58, %v1534_v57 }
  0x2c   :  { %711 = vmatpush.bf16.msrb.mxu0 %v1567_v13  ;;  %v1899_v0 = vld [vmem:[%s2846_s1 + $0x294] sm:$0xf0]  ;;  %v1834_v2 = vld [vmem:[%s2846_s1 + $0x94] sm:$0xf]  ;;  %v1344_v3 = vld [vmem:[%s2846_s1 + $0x98] sm:$0xf0]  ;;  %v1283_v8 = vor.u32 %v1818_v59, %v1280_v61 }
  0x2d   :  { %766 = vmatpush.bf16.msra.mxu2 %v1387_v10  ;;  %v1526_v6 = vld [vmem:[%s2846_s1 + $0x200] sm:$0xf]  ;;  %v1881_v9 = vld [vmem:[%s2846_s1 + $0x204] sm:$0xf0]  ;;  %v1816_v10 = vld [vmem:[%s2846_s1 + $0x4] sm:$0xf]  ;;  %v1599_v15 = vor.u32 %v1899_v0, %v1598_v63  ;;  %v1347_v19 = vor.u32 %v1834_v2, %v1344_v3 }
  0x2e   :  { %753 = vmatpush.bf16.msrb.mxu3 %v1315_v14  ;;  %v1272_v11 = vld [vmem:[%s2846_s1 + $0x8] sm:$0xf0]  ;;  %v1862_v12 = vld [vmem:[%s2846_s1 + $0x174] sm:$0xf]  ;;  %v1456_v13 = vld [vmem:[%s2846_s1 + $0x178] sm:$0xf0]  ;;  %v1527_v23 = vor.u32 %v1881_v9, %v1526_v6 }
  0x2f   :  { %725 = vmatpush.bf16.msrb.mxu1 %v1631_v21  ;;  %v1894_v14 = vld [vmem:[%s2846_s1 + $0x274] sm:$0xf]  ;;  %v1584_v16 = vld [vmem:[%s2846_s1 + $0x278] sm:$0xf0]  ;;  %v1590_v17 = vld [vmem:[%s2846_s1 + $0x280] sm:$0xf]  ;;  %v1275_v24 = vor.u32 %v1816_v10, %v1272_v11  ;;  %v1459_v28 = vor.u32 %v1862_v12, %v1456_v13 }
  0x30   :  { %712 = vmatpush.bf16.msrb.mxu0 %v1559_v25  ;;  %v1897_v18 = vld [vmem:[%s2846_s1 + $0x284] sm:$0xf0]  ;;  %v1258_v20 = vld [vmem:[%s2847_s0 + $0x10] sm:$0xf]  ;;  %v1814_v21 = vld [vmem:[%s2847_s0 + $0x28] sm:$0xf0]  ;;  %v1587_v29 = vor.u32 %v1894_v14, %v1584_v16 }
  0x31   :  { %767 = vmatpush.bf16.msra.mxu2 %v1379_v22  ;;  %v1832_v22 = vld [vmem:[%s2846_s1 + $0x84] sm:$0xf]  ;;  %v1336_v25 = vld [vmem:[%s2846_s1 + $0x88] sm:$0xf0]  ;;  %v1520_v27 = vld [vmem:[%s2846_s1 + $0x1f8] sm:$0xf0]  ;;  %v2477_v37 = vor.u32 %v1814_v21, %v1258_v20 }
  0x32   :  { %754 = vmatpush.bf16.msrb.mxu3 %v1307_v26  ;;  %v1878_v26 = vld [vmem:[%s2846_s1 + $0x1f4] sm:$0xf]  ;;  %v1648_v31 = vld [vmem:[%s2846_s1 + $0x2f8] sm:$0xf0]  ;;  %v1260_v34 = vld [vmem:[%s2847_s0 + $0x2c] sm:$0xf0]  ;;  %v1339_v38 = vor.u32 %v1832_v22, %v1336_v25 }
  0x33   :  { %726 = vmatpush.bf16.msrb.mxu1 %v1623_v33  ;;  %v1910_v30 = vld [vmem:[%s2846_s1 + $0x2f4] sm:$0xf]  ;;  %v1591_v33 = vor.u32 %v1897_v18, %v1590_v17  ;;  %v1448_v36 = vld [vmem:[%s2846_s1 + $0x168] sm:$0xf0]  ;;  %v1523_v41 = vor.u32 %v1878_v26, %v1520_v27  ;;  %v1876_v43 = vld [vmem:[%s2846_s1 + $0x1e4] sm:$0xf] }
  0x34   :  { %713 = vmatpush.bf16.msrb.mxu0 %v1551_v39  ;;  %1660 = vmatmul.msk.bf16.vlgmr.msrb.gmra.mxu2 %vm649_vm0, %v2371_v48  ;;  %v1811_v32 = vld [vmem:[%s2847_s0 + $0x14] sm:$0xf]  ;;  %v1892_v39 = vld [vmem:[%s2846_s1 + $0x264] sm:$0xf]  ;;  %v1651_v42 = vor.u32 %v1910_v30, %v1648_v31  ;;  %v1512_v46 = vld [vmem:[%s2846_s1 + $0x1e8] sm:$0xf0] }
  0x35   :  { %768 = vmatpush.bf16.msra.mxu2 %v1371_v35  ;;  %v1860_v35 = vld [vmem:[%s2846_s1 + $0x164] sm:$0xf]  ;;  %v2488_v44 = vor.u32 %v1811_v32, %v1260_v34  ;;  %v1858_v51 = vld [vmem:[%s2846_s1 + $0x154] sm:$0xf]  ;;  %v1568_v55 = vld [vmem:[%s2846_s1 + $0x258] sm:$0xf0]  ;;  %v1515_v56 = vor.u32 %v1876_v43, %v1512_v46 }
  0x36   :  { %755 = vmatpush.bf16.msrb.mxu3 %v1299_v40  ;;  %v1576_v40 = vld [vmem:[%s2846_s1 + $0x268] sm:$0xf0]  ;;  %v1451_v45 = vor.u32 %v1860_v35, %v1448_v36  ;;  %v1874_v58 = vld [vmem:[%s2846_s1 + $0x1d4] sm:$0xf]  ;;  %v1504_v61 = vld [vmem:[%s2846_s1 + $0x1d8] sm:$0xf0] }
  0x37   :  { %727 = vmatpush.bf16.msrb.mxu1 %v1615_v47  ;;  %v1908_v47 = vld [vmem:[%s2846_s1 + $0x2e4] sm:$0xf]  ;;  %v1579_v50 = vor.u32 %v1892_v39, %v1576_v40  ;;  %v1632_v63 = vld [vmem:[%s2846_s1 + $0x2d8] sm:$0xf0]  ;;  %v1432_v2 = vld [vmem:[%s2846_s1 + $0x148] sm:$0xf0] }
  0x38   :  { %714 = vmatpush.bf16.msrb.mxu0 %v1543_v52  ;;  %v1440_v52 = vld [vmem:[%s2846_s1 + $0x158] sm:$0xf0]  ;;  %v1888_v3 = vld [vmem:[%s2846_s1 + $0x244] sm:$0xf]  ;;  %v1560_v6 = vld [vmem:[%s2846_s1 + $0x248] sm:$0xf0] }
  0x39   :  { %769 = vmatpush.bf16.msra.mxu2 %v1363_v49  ;;  %v1640_v49 = vld [vmem:[%s2846_s1 + $0x2e8] sm:$0xf0]  ;;  %v1443_v59 = vor.u32 %v1858_v51, %v1440_v52  ;;  %v1872_v9 = vld [vmem:[%s2846_s1 + $0x1c4] sm:$0xf]  ;;  %v1563_v12 = vor.u32 %v1888_v3, %v1560_v6  ;;  %v1854_v13 = vld [vmem:[%s2846_s1 + $0x134] sm:$0xf] }
  0x3a   :  { %756 = vmatpush.bf16.msrb.mxu3 %v1291_v53  ;;  %v1890_v53 = vld [vmem:[%s2846_s1 + $0x254] sm:$0xf]  ;;  %v1643_v57 = vor.u32 %v1908_v47, %v1640_v49  ;;  %v1496_v10 = vld [vmem:[%s2846_s1 + $0x1c8] sm:$0xf0]  ;;  %v1904_v11 = vld [vmem:[%s2846_s1 + $0x2c4] sm:$0xf] }
  0x3b   :  { %728 = vmatpush.bf16.msrb.mxu1 %v1607_v62  ;;  %v1906_v62 = vld [vmem:[%s2846_s1 + $0x2d4] sm:$0xf]  ;;  %v1571_v0 = vor.u32 %v1890_v53, %v1568_v55  ;;  %v1424_v14 = vld [vmem:[%s2846_s1 + $0x138] sm:$0xf0]  ;;  %v1499_v17 = vor.u32 %v1872_v9, %v1496_v10  ;;  %v1852_v25 = vld [vmem:[%s2846_s1 + $0x124] sm:$0xf] }
  0x3c   :  { %715 = vmatpush.bf16.msrb.mxu0 %v1535_v7  ;;  %v1507_v7 = vor.u32 %v1874_v58, %v1504_v61  ;;  %v1552_v16 = vld [vmem:[%s2846_s1 + $0x238] sm:$0xf0]  ;;  %v1427_v20 = vor.u32 %v1854_v13, %v1424_v14  ;;  %v1902_v22 = vld [vmem:[%s2846_s1 + $0x2b4] sm:$0xf]  ;;  %v1416_v26 = vld [vmem:[%s2846_s1 + $0x128] sm:$0xf0] }
  0x3d   :  { %770 = vmatpush.bf16.msra.mxu2 %v1355_v1  ;;  %v1856_v1 = vld [vmem:[%s2846_s1 + $0x144] sm:$0xf]  ;;  %v1488_v21 = vld [vmem:[%s2846_s1 + $0x1b8] sm:$0xf0]  ;;  %v1419_v32 = vor.u32 %v1852_v25, %v1416_v26  ;;  %v1608_v35 = vld [vmem:[%s2846_s1 + $0x2a8] sm:$0xf0] }
  0x3e   :  { %757 = vmatpush.bf16.msrb.mxu3 %v1283_v8  ;;  %v1635_v8 = vor.u32 %v1906_v62, %v1632_v63  ;;  %v1884_v27 = vld [vmem:[%s2846_s1 + $0x224] sm:$0xf]  ;;  %v1408_v39 = vld [vmem:[%s2846_s1 + $0x118] sm:$0xf0]  ;;  %v1882_v40 = vld [vmem:[%s2846_s1 + $0x214] sm:$0xf] }
  0x3f   :  { %729 = vmatpush.bf16.msrb.mxu1 %v1599_v15  ;;  %v1886_v15 = vld [vmem:[%s2846_s1 + $0x234] sm:$0xf]  ;;  %v1868_v31 = vld [vmem:[%s2846_s1 + $0x1a4] sm:$0xf]  ;;  %v1472_v47 = vld [vmem:[%s2846_s1 + $0x198] sm:$0xf0] }
  0x40   :  { %716 = vmatpush.bf16.msrb.mxu0 %v1527_v23  ;;  %v1616_v23 = vld [vmem:[%s2846_s1 + $0x2b8] sm:$0xf0]  ;;  %v1900_v34 = vld [vmem:[%s2846_s1 + $0x2a4] sm:$0xf]  ;;  %v1898_v49 = vld [vmem:[%s2846_s1 + $0x294] sm:$0xf] }
  0x41   :  { %771 = vmatpush.bf16.msra.mxu2 %v1347_v19  ;;  %v1870_v19 = vld [vmem:[%s2846_s1 + $0x1b4] sm:$0xf]  ;;  %v1619_v30 = vor.u32 %v1902_v22, %v1616_v23  ;;  %v1611_v43 = vor.u32 %v1900_v34, %v1608_v35  ;;  %v1848_v52 = vld [vmem:[%s2846_s1 + $0x104] sm:$0xf]  ;;  %v1400_v53 = vld [vmem:[%s2846_s1 + $0x108] sm:$0xf0] }
  0x42   :  { %758 = vmatpush.bf16.msrb.mxu3 %v1275_v24  ;;  %v1555_v24 = vor.u32 %v1886_v15, %v1552_v16  ;;  %v1880_v55 = vld [vmem:[%s2846_s1 + $0x204] sm:$0xf]  ;;  %v1656_v58 = vld [vmem:[%s2846_s1 + $0x308] sm:$0xf0]  ;;  %v1403_v62 = vor.u32 %v1848_v52, %v1400_v53  ;;  %v1720_v9 = vld [vmem:[%s2848_s2 + $0x70] sm:$0xf] }
  0x43   :  { %730 = vmatpush.bf16.msrb.mxu1 %v1591_v33  ;;  %717 = vmatmul.bf16.vlgmr.msrb.gmra.mxu0 %v2477_v37  ;;  %v1480_v33 = vld [vmem:[%s2846_s1 + $0x1a8] sm:$0xf0]  ;;  %v1864_v63 = vld [vmem:[%s2846_s1 + $0x184] sm:$0xf]  ;;  %v1704_v14 = vld [vmem:[%s2848_s2 + $0x50] sm:$0xf] }
  0x44   :  { %779 = vmatpush.bf16.msra.mxu0 %v1459_v28  ;;  %v1544_v28 = vld [vmem:[%s2846_s1 + $0x228] sm:$0xf0]  ;;  %v1925_v15 = vld [vmem:[%s2848_s2 + $0x54] sm:$0xf0]  ;;  %v1924_v16 = vld [vmem:[%s2848_s2 + $0x54] sm:$0xf] }
  0x45   :  { %772 = vmatpush.bf16.msra.mxu2 %v1339_v38  ;;  %759 = vmatmul.bf16.vlgmr.msrb.gmra.mxu3 %v2276_v4  ;;  %v1624_v4 = vld [vmem:[%s2846_s1 + $0x2c8] sm:$0xf0]  ;;  %v1547_v36 = vor.u32 %v1884_v27, %v1544_v28  ;;  %v1850_v38 = vld [vmem:[%s2846_s1 + $0x114] sm:$0xf]  ;;  %v1922_v22 = vld [vmem:[%s2848_s2 + $0x44] sm:$0xf] }
  0x46   :  { %807 = vmatpush.bf16.msra.mxu3 %v1587_v29  ;;  %731 = vmatmul.bf16.vlgmr.msrb.gmra.mxu1 %v2488_v44  ;;  %v1627_v18 = vor.u32 %v1904_v11, %v1624_v4  ;;  %v1491_v29 = vor.u32 %v1870_v19, %v1488_v21  ;;  %v1411_v46 = vor.u32 %v1850_v38, %v1408_v39  ;;  %v1592_v3 = vld [vmem:[%s2846_s1 + $0x288] sm:$0xf0]  ;;  %v1926_v11 = vld [vmem:[%s2848_s2 + $0x64] sm:$0xf]  ;;  %v1923_v21 = vld [vmem:[%s2848_s2 + $0x44] sm:$0xf0] }
  0x47   :  { %793 = vmatpush.bf16.msra.mxu1 %v1523_v41  ;;  %v1536_v41 = vld [vmem:[%s2846_s1 + $0x218] sm:$0xf0]  ;;  %v1714_v4 = vld [vmem:[%s2848_s2 + $0x68] sm:$0xf0]  ;;  %v1688_v26 = vld [vmem:[%s2848_s2 + $0x30] sm:$0xf] }
  0x48   :  { %780 = vmatpush.bf16.msra.mxu0 %v1451_v45  ;;  %773 = vmatmul.bf16.vlgmr.msra.gmra.mxu2 %v2278_v5  ;;  %v1435_v5 = vor.u32 %v1856_v1, %v1432_v2  ;;  %v1866_v45 = vld [vmem:[%s2846_s1 + $0x194] sm:$0xf]  ;;  %v1539_v51 = vor.u32 %v1882_v40, %v1536_v41  ;;  %v1896_v2 = vld [vmem:[%s2846_s1 + $0x284] sm:$0xf]  ;;  %v1717_v13 = vor.u32 %v1926_v11, %v1714_v4  ;;  %v1921_v27 = vld [vmem:[%s2848_s2 + $0x34] sm:$0xf0] }
  0x49   :  { %821 = vmatpush.bf16.msrb.mxu2 %v1651_v42  ;;  %v1483_v42 = vor.u32 %v1868_v31, %v1480_v33  ;;  %v1920_v28 = vld [vmem:[%s2848_s2 + $0x34] sm:$0xf]  ;;  %v1919_v33 = vld [vmem:[%s2848_s2 + $0x24] sm:$0xf0]  ;;  %v1918_v34 = vld [vmem:[%s2848_s2 + $0x24] sm:$0xf] }
  0x4a   :  { %808 = vmatpush.bf16.msra.mxu3 %v1579_v50  ;;  %v1600_v50 = vld [vmem:[%s2846_s1 + $0x298] sm:$0xf0]  ;;  %v1672_v41 = vld [vmem:[%s2848_s2 + $0x10] sm:$0xf]  ;;  %v1914_v52 = vld [vmem:[%s2848_s2 + $0x4] sm:$0xf] }
  0x4b   :  { %794 = vmatpush.bf16.msra.mxu1 %v1515_v56  ;;  %v1528_v56 = vld [vmem:[%s2846_s1 + $0x208] sm:$0xf0]  ;;  %v1603_v61 = vor.u32 %v1898_v49, %v1600_v50  ;;  %v1664_v49 = vld [vmem:[%s2848_s2] sm:$0xf]  ;;  %v1915_v50 = vld [vmem:[%s2848_s2 + $0x4] sm:$0xf0] }
  0x4c   :  { %781 = vmatpush.bf16.msra.mxu0 %v1443_v59  ;;  %v1475_v59 = vor.u32 %v1866_v45, %v1472_v47  ;;  %v1531_v1 = vor.u32 %v1880_v55, %v1528_v56  ;;  %v1674_v47 = vld [vmem:[%s2848_s2 + $0x18] sm:$0xf0]  ;;  %v1666_v53 = vld [vmem:[%s2848_s2 + $0x8] sm:$0xf0]  ;;  %v1665_v55 = vor.u32 %v1915_v50, %v1664_v49 }
  0x4d   :  { %822 = vmatpush.bf16.msrb.mxu2 %v1643_v57  ;;  %v1912_v57 = vld [vmem:[%s2846_s1 + $0x304] sm:$0xf]  ;;  %v1669_v56 = vor.u32 %v1914_v52, %v1666_v53 }
  0x4e   :  { %809 = vmatpush.bf16.msra.mxu3 %v1571_v0  ;;  %v1464_v0 = vld [vmem:[%s2846_s1 + $0x188] sm:$0xf0]  ;;  %v1659_v6 = vor.u32 %v1912_v57, %v1656_v58 }
  0x4f   :  { %795 = vmatpush.bf16.msra.mxu1 %v1507_v7  ;;  %v1467_v7 = vor.u32 %v1864_v63, %v1464_v0 }
  0x50   :  { %782 = vmatpush.bf16.msra.mxu0 %v1435_v5  ;;  %v1929_v5 = vld [vmem:[%s2848_s2 + $0x74] sm:$0xf0] }
  0x51   :  { %823 = vmatpush.bf16.msrb.mxu2 %v1635_v8  ;;  %v1595_v8 = vor.u32 %v1896_v2, %v1592_v3 }
  0x52   :  { %810 = vmatpush.bf16.msra.mxu3 %v1563_v12 }
  0x53   :  { %796 = vmatpush.bf16.msra.mxu1 %v1499_v17  ;;  %v1705_v17 = vor.u32 %v1925_v15, %v1704_v14 }
  0x54   :  { %783 = vmatpush.bf16.msra.mxu0 %v1427_v20  ;;  %v1696_v20 = vld [vmem:[%s2848_s2 + $0x40] sm:$0xf] }
  0x55   :  { %824 = vmatpush.bf16.msrb.mxu2 %v1627_v18  ;;  %v1706_v18 = vld [vmem:[%s2848_s2 + $0x58] sm:$0xf0]  ;;  %v1697_v23 = vor.u32 %v1923_v21, %v1696_v20 }
  0x56   :  { %811 = vmatpush.bf16.msra.mxu3 %v1555_v24  ;;  %v1709_v19 = vor.u32 %v1924_v16, %v1706_v18  ;;  %v1698_v24 = vld [vmem:[%s2848_s2 + $0x48] sm:$0xf0] }
  0x57   :  { %797 = vmatpush.bf16.msra.mxu1 %v1491_v29  ;;  %v1701_v25 = vor.u32 %v1922_v22, %v1698_v24  ;;  %v1689_v29 = vor.u32 %v1921_v27, %v1688_v26  ;;  %v1746_v18 = vld [vmem:[%s2848_s2 + $0xa8] sm:$0xf0]  ;;  %v1933_v24 = vld [vmem:[%s2848_s2 + $0x94] sm:$0xf0]  ;;  %v1738_v27 = vld [vmem:[%s2848_s2 + $0x98] sm:$0xf0] }
  0x58   :  { %784 = vmatpush.bf16.msra.mxu0 %v1419_v32  ;;  %v1680_v32 = vld [vmem:[%s2848_s2 + $0x20] sm:$0xf] }
  0x59   :  { %825 = vmatpush.bf16.msrb.mxu2 %v1619_v30  ;;  %v1690_v30 = vld [vmem:[%s2848_s2 + $0x38] sm:$0xf0]  ;;  %v1681_v35 = vor.u32 %v1919_v33, %v1680_v32  ;;  %v1930_v32 = vld [vmem:[%s2848_s2 + $0x84] sm:$0xf] }
  0x5a   :  { %812 = vmatpush.bf16.msra.mxu3 %v1547_v36  ;;  %v1693_v31 = vor.u32 %v1920_v28, %v1690_v30  ;;  %v1682_v36 = vld [vmem:[%s2848_s2 + $0x28] sm:$0xf0]  ;;  %v1728_v30 = vld [vmem:[%s2848_s2 + $0x80] sm:$0xf] }
  0x5b   :  { %798 = vmatpush.bf16.msra.mxu1 %v1483_v42  ;;  %v1685_v38 = vor.u32 %v1918_v34, %v1682_v36  ;;  %v1917_v42 = vld [vmem:[%s2848_s2 + $0x14] sm:$0xf0] }
  0x5c   :  { %785 = vmatpush.bf16.msra.mxu0 %v1411_v46  ;;  %v1673_v46 = vor.u32 %v1917_v42, %v1672_v41 }
  0x5d   :  { %826 = vmatpush.bf16.msrb.mxu2 %v1611_v43  ;;  %v1916_v43 = vld [vmem:[%s2848_s2 + $0x14] sm:$0xf] }
  0x5e   :  { %813 = vmatpush.bf16.msra.mxu3 %v1539_v51  ;;  %v1677_v51 = vor.u32 %v1916_v43, %v1674_v47 }
  0x5f   :  { %799 = vmatpush.bf16.msra.mxu1 %v1475_v59 }
  0x60   :  { %786 = vmatpush.bf16.msra.mxu0 %v1403_v62 }
  0x61   :  { %827 = vmatpush.bf16.msrb.mxu2 %v1603_v61 }
  0x62   :  { %814 = vmatpush.bf16.msra.mxu3 %v1531_v1 }
  0x63   :  { %800 = vmatpush.bf16.msra.mxu1 %v1467_v7  ;;  %787 = vmatmul.bf16.vlgmr.msra.gmra.mxu0 %v2248_v54  ;;  %v1928_v54 = vld [vmem:[%s2848_s2 + $0x74] sm:$0xf] }
  0x64   :  { %842 = vmatpush.bf16.msrb.mxu0 %v1659_v6 }
  0x65   :  { %815 = vmatmul.bf16.vlgmr.msra.gmra.mxu3 %v2477_v37  ;;  %828 = vmatpush.bf16.msrb.mxu2 %v1595_v8  ;;  %v1721_v37 = vor.u32 %v1929_v5, %v1720_v9 }
  0x66   :  { %801 = vmatmul.bf16.vlgmr.msra.gmra.mxu1 %v2259_v60  ;;  %v1722_v60 = vld [vmem:[%s2848_s2 + $0x78] sm:$0xf0] }
  0x67   :  { %v1725_v10 = vor.u32 %v1928_v54, %v1722_v60  ;;  %991 = vmatpush.bf16.msrb.mxu1 %v1721_v37 }
  0x68   :  { %829 = vmatmul.bf16.vlgmr.msrb.gmra.mxu2 %v2488_v44  ;;  %v1927_v44 = vld [vmem:[%s2848_s2 + $0x64] sm:$0xf0] }
  0x69   :  { %1019 = vmatpush.bf16.msra.mxu0 %v1725_v10 }
  0x6d   :  { %1020 = vmatpush.bf16.msra.mxu0 %v1717_v13  ;;  %v1935_v13 = vld [vmem:[%s2848_s2 + $0xa4] sm:$0xf0] }
  0x71   :  { %1021 = vmatpush.bf16.msra.mxu0 %v1709_v19 }
  0x73   :  { %1661 = vmatmul.msk.bf16.vlgmr.msrb.gmra.mxu0 %vm649_vm0, %v2371_v48  ;;  %v1712_v48 = vld [vmem:[%s2848_s2 + $0x60] sm:$0xf] }
  0x74   :  { %v1713_v12 = vor.u32 %v1927_v44, %v1712_v48 }
  0x75   :  { %1022 = vmatpush.bf16.msra.mxu0 %v1701_v25  ;;  %v1932_v25 = vld [vmem:[%s2848_s2 + $0x94] sm:$0xf] }
  0x76   :  { %992 = vmatpush.bf16.msrb.mxu1 %v1713_v12  ;;  %v1744_v12 = vld [vmem:[%s2848_s2 + $0xa0] sm:$0xf]  ;;  %v1741_v28 = vor.u32 %v1932_v25, %v1738_v27 }
  0x77   :  { %v1745_v14 = vor.u32 %v1935_v13, %v1744_v12  ;;  %v1937_v12 = vld [vmem:[%s2849_s3 + $0x8] sm:$0xff] }
  0x78   :  { %v1945_v13 = vld [vmem:[%s2849_s3 + $0x48] sm:$0xff] }
  0x79   :  { %1023 = vmatpush.bf16.msra.mxu0 %v1693_v31  ;;  %1010 = vmatpush.bf16.msrb.mxu3 %v1745_v14  ;;  %v1931_v31 = vld [vmem:[%s2848_s2 + $0x84] sm:$0xf0]  ;;  %v1936_v14 = vld [vmem:[%s2849_s3] sm:$0xff] }
  0x7a   :  { %993 = vmatpush.bf16.msrb.mxu1 %v1705_v17  ;;  %v1934_v17 = vld [vmem:[%s2848_s2 + $0xa4] sm:$0xf]  ;;  %v1729_v34 = vor.u32 %v1931_v31, %v1728_v30 }
  0x7b   :  { %v1749_v21 = vor.u32 %v1934_v17, %v1746_v18 }
  0x7d   :  { %1024 = vmatpush.bf16.msra.mxu0 %v1685_v38  ;;  %1038 = vmatpush.bf16.msra.mxu2 %v1749_v21 }
  0x7e   :  { %994 = vmatpush.bf16.msrb.mxu1 %v1697_v23  ;;  %v1736_v23 = vld [vmem:[%s2848_s2 + $0x90] sm:$0xf] }
  0x7f   :  { %v1737_v26 = vor.u32 %v1933_v24, %v1736_v23 }
  0x81   :  { %1025 = vmatpush.bf16.msra.mxu0 %v1677_v51  ;;  %1011 = vmatpush.bf16.msrb.mxu3 %v1737_v26 }
  0x82   :  { %995 = vmatpush.bf16.msrb.mxu1 %v1689_v29  ;;  %1039 = vmatpush.bf16.msra.mxu2 %v1741_v28 }
  0x85   :  { %1026 = vmatpush.bf16.msra.mxu0 %v1669_v56  ;;  %1012 = vmatpush.bf16.msrb.mxu3 %v1729_v34  ;;  %v1205_v34 = vlaneseq }
  0x86   :  { %996 = vmatpush.bf16.msrb.mxu1 %v1681_v35  ;;  %v1730_v35 = vld [vmem:[%s2848_s2 + $0x88] sm:$0xf0] }
  0x87   :  { %v1733_v36 = vor.u32 %v1930_v32, %v1730_v35  ;;  %v1206_v35 = vand.u32 127, %v1205_v34 }
  0x89   :  { %1040 = vmatpush.bf16.msra.mxu2 %v1733_v36  ;;  %vm1207_vm4 = vcmp.lt.s32.totalorder %v1206_v35, 10 }
  0x8a   :  { %997 = vmatpush.bf16.msrb.mxu1 %v1673_v46 }
  0x8e   :  { %998 = vmatpush.bf16.msrb.mxu1 %v1665_v55 }
  0xa0   :  { %v662_v39 = vpop.f32.mrf.mxu0 }
  0xa3   :  { %v676_v45 = vpop.f32.mrf.mxu1 }
  0xa4   :  { %v677_v57 = vadd.f32 %v676_v45, %v662_v39 }
  0xa7   :  { %v690_v40 = vpop.f32.mrf.mxu2 }
  0xa8   :  { %v664_v58 = vpop.f32.mrf.mxu0  ;;  %v704_v61 = vpop.f32.mrf.mxu3  ;;  %v691_v63 = vadd.f32 %v690_v40, %v677_v57 }
  0xaa   :  { %v705_v1 = vadd.f32 %v704_v61, %v691_v63 }
  0xab   :  { %v678_v62 = vpop.f32.mrf.mxu1 }
  0xac   :  { %v679_v0 = vadd.f32 %v678_v62, %v664_v58 }
  0xaf   :  { %v692_v59 = vpop.f32.mrf.mxu2 }
  0xb0   :  { %v693_v8 = vadd.f32 %v692_v59, %v679_v0  ;;  %v706_v9 = vpop.f32.mrf.mxu3 }
  0xb2   :  { %v707_v54 = vadd.f32 %v706_v9, %v693_v8  ;;  %v1942_v8 = vld [vmem:[%s2849_s3 + $0x30] sm:$0xff] }
  0xb7   :  { %v746_v3 = vpop.f32.mrf.mxu2 }
  0xbf   :  { %v748_v10 = vpop.f32.mrf.mxu2 }
  0xc0   :  { %v718_v2 = vpop.f32.mrf.mxu0 }
  0xc1   :  { %v719_v6 = vadd.f32 %v718_v2, %v705_v1 }
  0xc3   :  { %v732_v7 = vpop.f32.mrf.mxu1 }
  0xc4   :  { %v733_v5 = vadd.f32 %v732_v7, %v719_v6  ;;  %v1081_v6 = vld [vmem:[%s2849_s3 + $0x70] sm:$0xf] }
  0xc5   :  { %v1139_v7 = vunpack.c.l.b16 %v1081_v6 }
  0xc6   :  { %v747_v48 = vadd.f32 %v746_v3, %v733_v5  ;;  %v1943_v3 = vld [vmem:[%s2849_s3 + $0x38] sm:$0xff] }
  0xc7   :  { %1177 = vmatpush.bf16.msra.mxu3 %v1943_v3  ;;  %v1154_v9 = vpack.c.b16 %v1139_v7, %v1139_v7 }
  0xc8   :  { %v720_v37 = vpop.f32.mrf.mxu0  ;;  %1950 = vtanh.f32 %v747_v48  ;;  %v760_v15 = vpop.f32.mrf.mxu3  ;;  %v1948_v48 = vld [vmem:[%s2849_s3 + $0x60] sm:$0xff] }
  0xc9   :  { %v721_v60 = vadd.f32 %v720_v37, %v707_v54  ;;  %v1175_v5 = vsel %vm1173_vm2, %v1154_v9, 0  ;;  %v1941_v54 = vld [vmem:[%s2849_s3 + $0x28] sm:$0xff] }
  0xca   :  { %1192 = vmatpush.bf16.msra.mxu1 %v1175_v5  ;;  %v1949_v37 = vld [vmem:[%s2849_s3 + $0x68] sm:$0xff] }
  0xcb   :  { %v734_v44 = vpop.f32.mrf.mxu1  ;;  %v774_v20 = vpop.f32.mrf.mxu2  ;;  %1178 = vmatpush.bf16.msra.mxu3 %v1942_v8 }
  0xcc   :  { %v735_v11 = vadd.f32 %v734_v44, %v721_v60  ;;  %v775_v41 = vadd.f32 %v774_v20, %v760_v15  ;;  %v1940_v60 = vld [vmem:[%s2849_s3 + $0x20] sm:$0xff]  ;;  %v1939_v44 = vld [vmem:[%s2849_s3 + $0x18] sm:$0xff] }
  0xcd   :  { %v1944_v15 = vld [vmem:[%s2849_s3 + $0x40] sm:$0xff] }
  0xce   :  { %v749_v4 = vadd.f32 %v748_v10, %v735_v11  ;;  %v1951_v16 = vpop.eup %1950  ;;  %1193 = vmatpush.bf16.msra.mxu1 %v1949_v37  ;;  %v1947_v10 = vld [vmem:[%s2849_s3 + $0x58] sm:$0xff]  ;;  %v1938_v11 = vld [vmem:[%s2849_s3 + $0x10] sm:$0xff] }
  0xcf   :  { %1179 = vmatpush.bf16.msra.mxu3 %v1941_v54 }
  0xd0   :  { %1952 = vtanh.f32 %v749_v4  ;;  %v762_v29 = vpop.f32.mrf.mxu3  ;;  %v1946_v4 = vld [vmem:[%s2849_s3 + $0x50] sm:$0xff] }
  0xd2   :  { %1194 = vmatpush.bf16.msra.mxu1 %v1948_v48 }
  0xd3   :  { %v776_v38 = vpop.f32.mrf.mxu2  ;;  %1180 = vmatpush.bf16.msra.mxu3 %v1940_v60 }
  0xd4   :  { %v777_v46 = vadd.f32 %v776_v38, %v762_v29 }
  0xd6   :  { %v1953_v19 = vpop.eup %1952  ;;  %1195 = vmatpush.bf16.msra.mxu1 %v1947_v10 }
  0xd7   :  { %v853_v22 = vpack.c.bf16 %v1953_v19, %v1951_v16  ;;  %1181 = vmatpush.bf16.msra.mxu3 %v1939_v44 }
  0xd9   :  { %999 = vmatmul.bf16.vlgmr.msrb.gmra.mxu1 %v853_v22  ;;  %1027 = vmatmul.bf16.vlgmr.msra.gmra.mxu0 %v853_v22 }
  0xda   :  { %1196 = vmatpush.bf16.msra.mxu1 %v1946_v4 }
  0xdb   :  { %1182 = vmatpush.bf16.msra.mxu3 %v1938_v11 }
  0xde   :  { %1197 = vmatpush.bf16.msra.mxu1 %v1945_v13 }
  0xdf   :  { %1183 = vmatpush.bf16.msra.mxu3 %v1937_v12 }
  0xe0   :  { %v788_v33 = vpop.f32.mrf.mxu0 }
  0xe1   :  { %v789_v43 = vadd.f32 %v788_v33, %v775_v41 }
  0xe2   :  { %1198 = vmatpush.bf16.msra.mxu1 %v1944_v15 }
  0xe3   :  { %v802_v39 = vpop.f32.mrf.mxu1  ;;  %1184 = vmatpush.bf16.msra.mxu3 %v1936_v14 }
  0xe4   :  { %v803_v49 = vadd.f32 %v802_v39, %v789_v43 }
  0xe8   :  { %v816_v40 = vpop.f32.mrf.mxu3  ;;  %v790_v42 = vpop.f32.mrf.mxu0 }
  0xe9   :  { %v791_v47 = vadd.f32 %v790_v42, %v777_v46  ;;  %v817_v51 = vadd.f32 %v816_v40, %v803_v49 }
  0xeb   :  { %v830_v45 = vpop.f32.mrf.mxu2  ;;  %v804_v50 = vpop.f32.mrf.mxu1 }
  0xec   :  { %v805_v55 = vadd.f32 %v804_v50, %v791_v47  ;;  %v831_v57 = vadd.f32 %v830_v45, %v817_v51 }
  0xf0   :  { %v818_v52 = vpop.f32.mrf.mxu3  ;;  %v844_v53 = vpop.f32.mrf.mxu0 }
  0xf1   :  { %v819_v56 = vadd.f32 %v818_v52, %v805_v55  ;;  %v845_v59 = vadd.f32 %v844_v53, %v831_v57 }
  0xf3   :  { %v832_v58 = vpop.f32.mrf.mxu2  ;;  %1954 = vtanh.f32 %v845_v59 }
  0xf4   :  { %v833_v61 = vadd.f32 %v832_v58, %v819_v56 }
  0xf8   :  { %v846_v62 = vpop.f32.mrf.mxu0 }
  0xf9   :  { %v847_v63 = vadd.f32 %v846_v62, %v833_v61  ;;  %v1955_v0 = vpop.eup %1954 }
  0xfb   :  { %1956 = vtanh.f32 %v847_v63 }
 0x101   :  { %v1957_v1 = vpop.eup %1956 }
 0x102   :  { %v854_v2 = vpack.c.bf16 %v1957_v1, %v1955_v0 }
 0x104   :  { %1750 = vmatmul.msk.bf16.vlgmr.msrb.gmra.mxu3 %vm987_vm1, %v854_v2  ;;  %1751 = vmatmul.msk.bf16.vlgmr.msra.gmra.mxu2 %vm987_vm1, %v854_v2 }
 0x156   :  { %v1000_v16 = vpop.f32.mrf.mxu1  ;;  %v1028_v17 = vpop.f32.mrf.mxu0 }
 0x15e   :  { %v1002_v22 = vpop.f32.mrf.mxu1  ;;  %v1030_v23 = vpop.f32.mrf.mxu0 }
 0x187   :  { %v1014_v18 = vpop.f32.mrf.mxu3  ;;  %v1042_v19 = vpop.f32.mrf.mxu2 }
 0x188   :  { %v1015_v20 = vadd.f32 %v1014_v18, %v1000_v16  ;;  %v1043_v21 = vadd.f32 %v1042_v19, %v1028_v17 }
 0x18a   :  { %1958 = vtanh.f32 %v1015_v20 }
 0x18b   :  { %1960 = vtanh.f32 %v1043_v21 }
 0x18f   :  { %v1016_v24 = vpop.f32.mrf.mxu3  ;;  %v1044_v25 = vpop.f32.mrf.mxu2 }
 0x190   :  { %v1017_v26 = vadd.f32 %v1016_v24, %v1002_v22  ;;  %v1045_v27 = vadd.f32 %v1044_v25, %v1030_v23  ;;  %v1959_v28 = vpop.eup %1958 }
 0x191   :  { %v1961_v29 = vpop.eup %1960 }
 0x192   :  { %1962 = vtanh.f32 %v1017_v26 }
 0x193   :  { %1964 = vtanh.f32 %v1045_v27 }
 0x198   :  { %v1963_v30 = vpop.eup %1962 }
 0x199   :  { %v1965_v31 = vpop.eup %1964  ;;  %v1051_v32 = vpack.c.bf16 %v1963_v30, %v1959_v28 }
 0x19a   :  { %v1052_v33 = vpack.c.bf16 %v1965_v31, %v1961_v29 }
 0x19b   :  { %1185 = vmatmul.bf16.vlgmr.msra.gmra.mxu3 %v1051_v32 }
 0x19c   :  { %1808 = vmatmul.msk.bf16.vlgmr.msra.gmra.mxu1 %vm1169_vm3, %v1052_v33 }
 0x219   :  { %v1200_v36 = vpop.f32.mrf.mxu1 }
 0x21e   :  { %v1186_v38 = vpop.f32.mrf.mxu3 }
 0x21f   :  { %v1201_v39 = vadd.f32 %v1200_v36, %v1186_v38 }
 0x221   :  { %v1208_v40 = vsel %vm1207_vm4, %v1201_v39, -inf  ;;  %v1202_v41 = vpop.f32.mrf.mxu1 }
 0x222   :  { %1210 = vmax.xlane.f32.xlu0 %v1208_v40 }
 0x226   :  { %v1188_v42 = vpop.f32.mrf.mxu3 }
 0x227   :  { %v1203_v43 = vadd.f32 %v1202_v41, %v1188_v42 }
 0x229   :  { %v1209_v45 = vsel %vm1207_vm4, %v1203_v43, -inf }
 0x22a   :  { %1212 = vmax.xlane.f32.xlu0 %v1209_v45 }
 0x295   :  { %v1211_v46 = vpop.xlane.xlu0 %1210 }
 0x296   :  { %v1214_v47 = vsub.f32 %v1201_v39, %v1211_v46 }
 0x298   :  { %v1216_v49 = vsel %vm1207_vm4, %v1214_v47, -inf }
 0x299   :  { %v1218_v50 = vmul.f32 1.442695, %v1216_v49 }
 0x29b   :  { %1966 = vpow2.f32 %v1218_v50 }
 0x29d   :  { %v1213_v51 = vpop.xlane.xlu0 %1212 }
 0x29e   :  { %v1215_v52 = vsub.f32 %v1203_v43, %v1213_v51 }
 0x2a0   :  { %v1217_v53 = vsel %vm1207_vm4, %v1215_v52, -inf }
 0x2a1   :  { %v1967_v55 = vpop.eup %1966  ;;  %v1220_v56 = vmul.f32 1.442695, %v1217_v53 }
 0x2a2   :  { %1222 = vadd.xlane.f32.xlu1 %v1967_v55 }
 0x2a3   :  { %1968 = vpow2.f32 %v1220_v56 }
 0x2a9   :  { %v1969_v57 = vpop.eup %1968 }
 0x2aa   :  { %1224 = vadd.xlane.f32.xlu1 %v1969_v57 }
 0x315   :  { %v1223_v58 = vpop.xlane.xlu1 %1222 }
 0x316   :  { %1970 = vlog2.f32 %v1223_v58 }
 0x31c   :  { %v1971_v59 = vpop.eup %1970 }
 0x31d   :  { %v1227_v61 = vmul.f32 0.6931472, %v1971_v59  ;;  %v1225_v62 = vpop.xlane.xlu1 %1224 }
 0x31e   :  { %1972 = vlog2.f32 %v1225_v62 }
 0x31f   :  { %v1230_v63 = vadd.f32 %v1227_v61, %v1211_v46 }
 0x321   :  { %v1232_v0 = vsub.f32 %v1201_v39, %v1230_v63 }
 0x323   :  { %1234 = vst [vmem:[%s2850_s4] sm:$0xff] %v1232_v0 }
 0x324   :  { %v1973_v1 = vpop.eup %1972 }
 0x325   :  { %v1229_v2 = vmul.f32 0.6931472, %v1973_v1 }
 0x327   :  { %v1231_v3 = vadd.f32 %v1229_v2, %v1213_v51 }
 0x329   :  { %v1233_v6 = vsub.f32 %v1203_v43, %v1231_v3 }
 0x32b   :  { %1235 = vst [vmem:[%s2850_s4 + $0x8] sm:$0xff] %v1233_v6 }

</bundles_post_ra>
